<compile_context>
chip_gen: v5e
topology: v5e:2x2
jax: 0.10.0
libtpu: 0.0.40
codegen_flags: <defaults>
</compile_context>

<pallas_src>
import functools

import jax
import jax.numpy as jnp
from jax.experimental import pallas as pl
from jax.experimental.pallas import tpu as pltpu


def _round_up(x, m):
    return (x + m - 1) // m * m


def _embedding_kernel(ids_ref, table_ref, out_ref, *, pack, num_types):
    # ids_ref:   (tile_rows, pack)              int32  (pack node ids per row)
    # table_ref: (pack*num_types, pack*emb_dim) f32    (block-diagonal table)
    # out_ref:   (tile_rows, pack*emb_dim)      f32    (lane-dense output)
    ids = ids_ref[...]                                   # (tm, pack)
    tm = ids.shape[0]
    t_iota = jax.lax.broadcasted_iota(jnp.int32, (tm, num_types), 1)

    # Build the concatenated one-hot: one_hot[:, r*num_types + t] == (ids[:, r] == t)
    one_hots = []
    for r in range(pack):                                # pack is a small static int
        one_hots.append((ids[:, r : r + 1] == t_iota).astype(table_ref.dtype))
    if pack == 1:
        one_hot = one_hots[0]                            # (tm, num_types)
    else:
        one_hot = jnp.concatenate(one_hots, axis=-1)     # (tm, pack*num_types)

    # Lookup == one_hot @ block-diagonal table  (single MXU matmul, full-lane out)
    out_ref[...] = jnp.dot(
        one_hot, table_ref[...], preferred_element_type=jnp.float32
    ).astype(out_ref.dtype)


def type_dict_node_encoder(x, emb_table, *, tile_rows=1024):
    """Pallas equivalent of TypeDictNodeEncoder.forward.

    Args:
      x:         [N, F] integer node features; only column 0 is used.
      emb_table: [num_types, emb_dim] float32 embedding weights.
      tile_rows: packed output rows per grid step (clamped / rounded to a
                 multiple of 8; each row holds `128 // emb_dim` nodes when
                 emb_dim divides 128).
    Returns:
      [N, emb_dim] float32 embedded node features.
    """
    n_nodes = x.shape[0]
    num_types, emb_dim = emb_table.shape

    # Lane packing factor: nodes per 128-lane output row.
    if emb_dim <= 128 and 128 % emb_dim == 0:
        pack = 128 // emb_dim
    else:
        pack = 1
    row_width = pack * emb_dim
    vocab = pack * num_types

    ids = x[:, 0].astype(jnp.int32)                      # (N,)

    # Pad so every grid step is a full tile (id 0 is always a valid index).
    m = pl.cdiv(n_nodes, pack)                           # packed rows needed
    tile_rows = max(8, min(tile_rows, _round_up(m, 8)))  # multiple of 8 sublanes
    m_pad = _round_up(m, tile_rows)
    pad_n = m_pad * pack - n_nodes
    if pad_n:
        ids = jnp.pad(ids, (0, pad_n))
    ids_packed = ids.reshape(m_pad, pack)                # (m_pad, pack)

    # Block-diagonal replicated table: block r routes ids[:, r] to output
    # columns [r*emb_dim, (r+1)*emb_dim).  Tiny (vocab x row_width) f32.
    big_table = jnp.kron(
        jnp.eye(pack, dtype=jnp.float32), emb_table.astype(jnp.float32)
    )                                                    # (vocab, row_width)

    grid = (m_pad // tile_rows,)
    kernel = functools.partial(_embedding_kernel, pack=pack, num_types=num_types)

    bytes_accessed = (
        m_pad * pack * 4          # ids read
        + vocab * row_width * 4   # table read
        + m_pad * row_width * 4   # output write
    )

    out_packed = pl.pallas_call(
        kernel,
        out_shape=jax.ShapeDtypeStruct((m_pad, row_width), jnp.float32),
        grid_spec=pltpu.PrefetchScalarGridSpec(
            num_scalar_prefetch=0,
            grid=grid,
            in_specs=[
                # packed ids tile, marched over node rows
                pl.BlockSpec((tile_rows, pack), lambda i: (i, 0)),
                # full (block-diagonal) embedding table, resident every step
                pl.BlockSpec((vocab, row_width), lambda i: (0, 0)),
            ],
            out_specs=pl.BlockSpec((tile_rows, row_width), lambda i: (i, 0)),
        ),
        compiler_params=pltpu.CompilerParams(
            dimension_semantics=("parallel",),
        ),
        cost_estimate=pl.CostEstimate(
            flops=2 * m_pad * vocab * row_width,
            transcendentals=0,
            bytes_accessed=bytes_accessed,
        ),
    )(ids_packed, big_table)

    # (m_pad, pack*emb_dim) -> (m_pad*pack, emb_dim) is a pure row-major reshape.
    out = out_packed.reshape(m_pad * pack, emb_dim)[:n_nodes]
    return out


if __name__ == "__main__":
    # Small, deterministic configuration consistent with the module:
    #   cfg.dataset.node_encoder_num_types = 8, emb_dim = 32
    num_types = 8
    emb_dim = 32
    n_feats = 4  # batch.x has >=1 feature column; only column 0 is used

    key = jax.random.PRNGKey(0)
    k_table, k_ids_a, k_ids_b = jax.random.split(key, 3)

    # torch.nn.Embedding default init: weight ~ N(0, 1)
    emb_table = jax.random.normal(k_table, (num_types, emb_dim), dtype=jnp.float32)

    # Two cases: tiny batch, and a non-pack/tile-divisible N to exercise padding.
    for n_nodes, k in ((16, k_ids_a), (1000, k_ids_b)):
        x = jax.random.randint(k, (n_nodes, n_feats), 0, num_types, dtype=jnp.int32)
        out = type_dict_node_encoder(x, emb_table)
        out = jax.block_until_ready(out)

        ref = emb_table[x[:, 0]]  # plain-JAX reference lookup
        assert out.shape == (n_nodes, emb_dim)
        assert jnp.allclose(out, ref, atol=1e-6), f"mismatch vs reference (N={n_nodes})"

    print("KERNEL_OK")
</pallas_src>

<mosaic_0001>
module attributes {stable_mosaic.version = 11 : i64} {
  func.func @_embedding_kernel(%arg0: i32, %arg1: memref<8x4xi32, #tpu.memory_space<vmem>>, %arg2: memref<32x128xf32, #tpu.memory_space<vmem>>, %arg3: memref<8x128xf32, #tpu.memory_space<vmem>>) attributes {dimension_semantics = [#tpu.dimension_semantics<parallel>], iteration_bounds = array<i64: 1>, scalar_prefetch = 0 : i64, scratch_operands = 0 : i64, tpu.core_type = #tpu.core_type<tc>, window_params = [{transform_indices = @transform_0, window_bounds = array<i64: 8, 4>}, {pipeline_mode = #tpu.pipeline_mode<synchronous>, transform_indices = @transform_1, window_bounds = array<i64: 32, 128>}, {transform_indices = @transform_2, window_bounds = array<i64: 8, 128>}]} {
    %c0 = arith.constant 0 : index
    %c0_0 = arith.constant 0 : index
    %0 = vector.load %arg1[%c0, %c0_0] : memref<8x4xi32, #tpu.memory_space<vmem>>, vector<8x4xi32>
    %1 = tpu.iota {dimensions = array<i32: 1>} : vector<8x8xi32>
    %2 = vector.extract_strided_slice %0 {offsets = [0, 0], sizes = [8, 1], strides = [1, 1]} : vector<8x4xi32> to vector<8x1xi32>
    %3 = vector.broadcast %2 : vector<8x1xi32> to vector<8x8xi32>
    %4 = arith.cmpi eq, %3, %1 : vector<8x8xi32>
    %5 = arith.extui %4 : vector<8x8xi1> to vector<8x8xi32>
    %6 = arith.sitofp %5 : vector<8x8xi32> to vector<8x8xf32>
    %7 = vector.extract_strided_slice %0 {offsets = [0, 1], sizes = [8, 1], strides = [1, 1]} : vector<8x4xi32> to vector<8x1xi32>
    %8 = vector.broadcast %7 : vector<8x1xi32> to vector<8x8xi32>
    %9 = arith.cmpi eq, %8, %1 : vector<8x8xi32>
    %10 = arith.extui %9 : vector<8x8xi1> to vector<8x8xi32>
    %11 = arith.sitofp %10 : vector<8x8xi32> to vector<8x8xf32>
    %12 = vector.extract_strided_slice %0 {offsets = [0, 2], sizes = [8, 1], strides = [1, 1]} : vector<8x4xi32> to vector<8x1xi32>
    %13 = vector.broadcast %12 : vector<8x1xi32> to vector<8x8xi32>
    %14 = arith.cmpi eq, %13, %1 : vector<8x8xi32>
    %15 = arith.extui %14 : vector<8x8xi1> to vector<8x8xi32>
    %16 = arith.sitofp %15 : vector<8x8xi32> to vector<8x8xf32>
    %17 = vector.extract_strided_slice %0 {offsets = [0, 3], sizes = [8, 1], strides = [1, 1]} : vector<8x4xi32> to vector<8x1xi32>
    %18 = vector.broadcast %17 : vector<8x1xi32> to vector<8x8xi32>
    %19 = arith.cmpi eq, %18, %1 : vector<8x8xi32>
    %20 = arith.extui %19 : vector<8x8xi1> to vector<8x8xi32>
    %21 = arith.sitofp %20 : vector<8x8xi32> to vector<8x8xf32>
    %22 = tpu.concatenate %6, %11, %16, %21 in 1 : vector<8x8xf32>, vector<8x8xf32>, vector<8x8xf32>, vector<8x8xf32> -> vector<8x32xf32>
    %c0_1 = arith.constant 0 : index
    %c0_2 = arith.constant 0 : index
    %23 = vector.load %arg2[%c0_1, %c0_2] : memref<32x128xf32, #tpu.memory_space<vmem>>, vector<32x128xf32>
    %cst = arith.constant dense<0.000000e+00> : vector<8x128xf32>
    %24 = tpu.matmul %22, %23, %cst {dimension_numbers = #tpu.dot_dimension_numbers<[1], [0], [0], [1], [0, 0, 1, 1], [], []>} : vector<8x32xf32>, vector<32x128xf32>, vector<8x128xf32> -> vector<8x128xf32>
    %c0_3 = arith.constant 0 : index
    %c0_4 = arith.constant 0 : index
    %25 = vector.load %arg3[%c0_3, %c0_4] : memref<8x128xf32, #tpu.memory_space<vmem>>, vector<8x128xf32>
    tpu.vector_store %arg3[%c0_3, %c0_4], %24 {strides = array<i32>} : memref<8x128xf32, #tpu.memory_space<vmem>>, vector<8x128xf32>,
    return
  }
  func.func @transform_0(%arg0: i32) -> (i32, i32) {
    %c0_i32 = arith.constant 0 : i32
    %c0_i32_0 = arith.constant 0 : i32
    return %arg0, %c0_i32 : i32, i32
  }
  func.func @transform_1(%arg0: i32) -> (i32, i32) {
    %c0_i32 = arith.constant 0 : i32
    %c0_i32_0 = arith.constant 0 : i32
    %c0_i32_1 = arith.constant 0 : i32
    return %c0_i32, %c0_i32_0 : i32, i32
  }
  func.func @transform_2(%arg0: i32) -> (i32, i32) {
    %c0_i32 = arith.constant 0 : i32
    %c0_i32_0 = arith.constant 0 : i32
    return %arg0, %c0_i32 : i32, i32
  }
}

</mosaic_0001>

<bundles_post_ra>
// kernel: tpu_custom_call.1
= control target key start
LH: loop header
LB: loop body
LE: loop exit
PB: predicated region body
PF: predicated region fallthrough
CT: control target
= control target key end

     0   :  { %7 = vsyncpa [#allocation3], 0  ;;  %s227_s0 = inlined_call_operand.vmem [shape: s32[8,4], index: 0, kind: input, shape index: {}]   ;;  %s228_s1 = inlined_call_operand.hbm [shape: f32[32,128], index: 1, kind: input, shape index: {}]   ;;  %s229_s2 = inlined_call_operand.hbm [shape: f32[8,128], index: 2, kind: output, shape index: {}]  }
   0x1   :  { %8 = vsyncpa [#allocation4], 0  ;;  %s15_s11 = sshll.u32 %s228_s1, 4  ;;  %s192_s12 = smov [#allocation2]   ;;  %s16_s11 = int_to_ptr.hbm [resolvable:$true] %s15_s11 }
   0x2   :  { %s17_s13 = sshll.u32 %s192_s12, 4  ;;  %s193_s14 = smov 128   ;;  %s18_s13 = int_to_ptr.vmem [resolvable:$true] %s17_s13 }
   0x3   :  { %s194_s15 = smov 8  }
   0x4   :  { %23 = dma.hbm_to_vmem [thread:$0]  %s16_s11, 512, %s18_s13, [#allocation3], %s193_s14, %s193_s14, %s194_s15  }
   0x5   :  { %188 = dma.done.wait [#allocation3], 512  }
   0x6   :  { %189 = vsyncadd [#allocation3], 4294966784  ;;  %v195_v0 = vmov 3   ;;  %v196_v1 = vmov 1   ;;  %v28_v2 = vld [vmem:[%s227_s0] sm:$0xff]  ;;  %v197_v3 = vmov 2   ;;  %v29_v5 = vlaneseq }
   0x7   :  { %137 = vset.pattern.permute.xlu1 %v195_v0  ;;  %135 = vset.pattern.permute.xlu0 %v196_v1  ;;  %v198_v4 = vmov 0   ;;  %v199_v9 = vmov 0.0   ;;  %s200_s1 = smov 24   ;;  %s201_s0 = smov 16   ;;  %v76_v16 = vld [vmem:[#allocation2 + $0x18] sm:$0xff]  ;;  %v75_v17 = vld [vmem:[#allocation2 + $0x10] sm:$0xff] }
   0x8   :  { %50 = vperm.xlu1 %137, %v28_v2   ;;  %38 = vperm.xlu0 %135, %v28_v2   ;;  %v30_v6 = vand.u32 127, %v29_v5  ;;  %v74_v18 = vld [vmem:[#allocation2 + $0x8] sm:$0xff]  ;;  %v73_v19 = vld [vmem:[#allocation2] sm:$0xff]  ;;  %vm67_vm4 = vcmask 64512   ;;  %vm69_vm5 = vcmask 130048   ;;  %vm71_vm6 = vcmask 195584  }
   0x9   :  { %93 = vmatpush.msra.mxu0 %v76_v16  ;;  %vm77_vm7 = vcmask 261120   ;;  %s202_s18 = smov [#allocation5]   ;;  %s109_s22 = sshll.u32 %s229_s2, 4  ;;  %s110_s22 = int_to_ptr.hbm [resolvable:$true] %s109_s22 }
   0xa   :  { %s107_s19 = sshll.u32 %s202_s18, 4  ;;  %s108_s19 = int_to_ptr.vmem [resolvable:$true] %s107_s19 }
   0xb   :  { %94 = vmatpush.msra.mxu0 %v75_v17 }
   0xd   :  { %95 = vmatpush.msra.mxu0 %v74_v18 }
   0xf   :  { %96 = vmatpush.msra.mxu0 %v73_v19 }
  0x10   :  { %136 = vset.pattern.permute.xlu0 %v197_v3  ;;  %138 = vset.pattern.permute.xlu1 %v198_v4 }
  0x11   :  { %44 = vperm.xlu0 %136, %v28_v2   ;;  %32 = vperm.xlu1 %138, %v28_v2  }
  0x19   :  { %139 = vset.pattern.permute.xlu0 %v195_v0 }
  0x7a   :  { %v51_v7 = vpop.permute.xlu1 %50  ;;  %v39_v8 = vpop.permute.xlu0 %38 }
  0x7b   :  { %vm52_vm0 = vcmp.eq.s32.totalorder %v51_v7, %v30_v6  ;;  %vm40_vm1 = vcmp.eq.s32.totalorder %v39_v8, %v30_v6 }
  0x7c   :  { %v122_v10 = vsel %vm52_vm0, 1.0, %v199_v9  ;;  %v120_v11 = vsel %vm40_vm1, 1.0, %v199_v9 }
  0x7d   :  { %64 = vrot.lane.b32.xlu1 %v122_v10, %s200_s1  ;;  %56 = vrot.lane.b32.xlu2 %v120_v11, %s194_s15 }
  0x83   :  { %v45_v12 = vpop.permute.xlu0 %44  ;;  %v33_v14 = vpop.permute.xlu1 %32 }
  0x84   :  { %vm46_vm2 = vcmp.eq.s32.totalorder %v45_v12, %v30_v6  ;;  %vm34_vm3 = vcmp.eq.s32.totalorder %v33_v14, %v30_v6 }
  0x85   :  { %v121_v13 = vsel %vm46_vm2, 1.0, %v199_v9  ;;  %v119_v15 = vsel %vm34_vm3, 1.0, %v199_v9 }
  0x86   :  { %60 = vrot.lane.b32.xlu2 %v121_v13, %s201_s0 }
  0xd7   :  { %v57_v20 = vpop.permute.xlu2 %56 }
  0xd8   :  { %v68_v21 = vsel %vm67_vm4, %v119_v15, %v57_v20 }
  0xe0   :  { %v61_v22 = vpop.permute.xlu2 %60 }
  0xe1   :  { %v70_v23 = vsel %vm69_vm5, %v68_v21, %v61_v22 }
  0xef   :  { %v65_v24 = vpop.permute.xlu1 %64 }
  0xf0   :  { %v72_v25 = vsel %vm71_vm6, %v70_v23, %v65_v24 }
  0xf1   :  { %123 = vmatmul.msk.f32.vlgmr.msra.gmra.mxu0 %vm77_vm7, %v72_v25 }
 0x16e   :  { %v98_v26 = vpop.f32.mrf.mxu0 }
 0x16f   :  { %101 = vst [vmem:[#allocation5] sm:$0xff] %v98_v26 }
 0x170   :  { %112 = dma.vmem_to_hbm [thread:$0]  %s108_s19, 128, %s110_s22, [#allocation4]  }
 0x171   :  { %190 = dma.done.wait [#allocation4], 128  }
 0x172   :  { %191 = vsyncadd [#allocation4], 4294967168 }
 0x173   :  { %117 = vsyncpa [#allocation3], 1 }
 0x174   :  { %118 = vsyncpa [#allocation4], 1 }

</bundles_post_ra>
